<compile_context>
chip_gen: v6e
topology: v6e:2x2x1
jax: 0.10.0
libtpu: 0.0.40
codegen_flags: <defaults>
</compile_context>

<pallas_src>
import functools

import jax
import jax.numpy as jnp
from jax.experimental import pallas as pl
from jax.experimental.pallas import tpu as pltpu

LANES = 128
SUBLANES = 8
MIN_PALLAS_ELEMS = 8 * LANES   # below this, plain jnp beats kernel launch overhead


@functools.lru_cache(maxsize=None)
def _num_tensorcores():
    """Best-effort TensorCores-per-chip (v7x: 2, v5e/v6e: 1)."""
    try:
        info = pltpu.get_tpu_info()
    except Exception:
        return 1
    for name in ("num_cores", "core_count", "num_tensorcores",
                 "tensorcores_per_chip", "cores_per_chip", "num_tensor_cores"):
        n = getattr(info, name, None)
        if isinstance(n, int) and n >= 1:
            return n
    return 1


@functools.lru_cache(maxsize=None)
def _tile_policy():
    """Per-generation (tile_rows_max, vmem_limit_bytes).

    4096 rows = 2 MiB/buffer (8 MiB double-buffered inputs) on VMEM-tight v7x
    (64 MiB physical); 8192 rows = 4 MiB/buffer on 128-MiB v5e/v6e. The limit
    leaves generous headroom for Mosaic's materialized elementwise temporaries.
    """
    tile_rows_max, vmem_limit = 4096, 48 * 1024 * 1024
    try:
        vmem = pltpu.get_tpu_info().vmem_capacity_bytes
        if vmem >= 100 * 1024 * 1024:           # v5e / v6e (128 MiB physical)
            tile_rows_max, vmem_limit = 8192, 64 * 1024 * 1024
    except Exception:
        pass
    return tile_rows_max, vmem_limit


def _loss_terms(x, w, one_plus_margin):
    """sum(log((1 + margin) - clamp(x)) * w) in f32 (plain JAX; tails/fallback)."""
    xc = jnp.clip(x.astype(jnp.float32), 0.0001, 0.9999)
    return jnp.sum(jnp.log(one_plus_margin - xc) * w.astype(jnp.float32))


def _simmin_kernel(x_ref, w_ref, o_ref, acc_ref, *,
                   one_plus_margin, tile_rows, valid_rows,
                   blocks_per_split, first_masked_block, need_mask):
    c = pl.program_id(0)   # TensorCore-split index (CORE_PARALLEL, or size 1)
    i = pl.program_id(1)   # tile index within the split (reduction axis)

    @pl.when(i == 0)
    def _():
        acc_ref[...] = jnp.zeros_like(acc_ref)

    x = x_ref[...].astype(jnp.float32)
    w = w_ref[...].astype(jnp.float32)
    x = jnp.clip(x, 0.0001, 0.9999)          # clip BEFORE log: keeps OOB garbage finite
    val = jnp.log(one_plus_margin - x) * w   # (1 + margin) constant-folded at trace time

    def accumulate(v):
        # Per-(sublane, lane) partial sums: pure VPU adds, no per-tile XLU reduce.
        acc_ref[...] += v.reshape(tile_rows // SUBLANES, SUBLANES, LANES).sum(axis=0)

    if need_mask:
        block_idx = c * blocks_per_split + i   # UNCLAMPED global block index

        @pl.when(block_idx < first_masked_block)
        def _():                               # interior tiles: hot, unmasked path
            accumulate(val)

        @pl.when(block_idx >= first_masked_block)
        def _():                               # ragged tail / duplicated clamped blocks
            row0 = block_idx * tile_rows
            row_ids = row0 + jax.lax.broadcasted_iota(
                jnp.int32, (tile_rows, LANES), 0)
            # jnp.where is a true select: NaN/Inf from garbage rows is discarded.
            accumulate(jnp.where(row_ids < valid_rows, val, 0.0))
    else:
        accumulate(val)

    @pl.when(i == pl.num_programs(1) - 1)
    def _():
        # Lane/sublane-dense (1, 8, 128) store; the tiny final reduce is done in XLA.
        o_ref[...] = acc_ref[...][None, :, :]


def sim_min_loss(x, weights, margin=0.0):
    assert x.shape == weights.shape
    n_elems = x.size
    assert n_elems > 0
    one_plus_margin = 1.0 + float(margin)

    xf = x.reshape(-1)
    wf = weights.reshape(-1)

    # Sub-32-bit dtypes pack along sublanes -> rows must round to 8 * packing.
    packing = max(4 // jnp.dtype(x.dtype).itemsize,
                  4 // jnp.dtype(weights.dtype).itemsize, 1)
    row_align = SUBLANES * packing

    rem = n_elems % LANES
    bulk = n_elems - rem
    rows = bulk // LANES

    # Tiny inputs (or a bulk too small for a legal tile): skip the Pallas launch.
    if n_elems < MIN_PALLAS_ELEMS or rows < row_align:
        return -_loss_terms(xf, wf, one_plus_margin) / jnp.float32(n_elems)

    # Ragged (<128 element) tail: reduce it in plain JAX instead of jnp.pad-ing
    # the whole array (pad would re-read + re-write both inputs in HBM).
    tail_sum = jnp.float32(0.0)
    if rem:
        tail_sum = _loss_terms(xf[bulk:], wf[bulk:], one_plus_margin)
        xf = xf[:bulk]
        wf = wf[:bulk]

    x2 = xf.reshape(rows, LANES)
    w2 = wf.reshape(rows, LANES)

    # Per-generation tile size; always a multiple of the dtype's sublane packing.
    tile_rows_max, vmem_limit = _tile_policy()
    tile_rows = min(tile_rows_max, (rows // row_align) * row_align)
    n_tiles = pl.cdiv(rows, tile_rows)

    # Split the reduction across TensorCores only when the chip has more than one.
    num_cores = _num_tensorcores()
    num_splits = num_cores if (num_cores > 1 and n_tiles >= num_cores) else 1
    blocks_per_split = pl.cdiv(n_tiles, num_splits)

    covered_rows = num_splits * blocks_per_split * tile_rows
    need_mask = covered_rows != rows
    first_masked_block = rows // tile_rows   # first block that can touch invalid rows
    last_block = n_tiles - 1

    def in_index_map(c, i):
        # Clamp so duplicated trailing blocks never address past the array;
        # the in-kernel row mask zeroes their (re-read) contribution.
        return (jnp.minimum(c * blocks_per_split + i, last_block), 0)

    kernel = functools.partial(
        _simmin_kernel,
        one_plus_margin=one_plus_margin,
        tile_rows=tile_rows,
        valid_rows=rows,
        blocks_per_split=blocks_per_split,
        first_masked_block=first_masked_block,
        need_mask=need_mask,
    )

    def run(dim_sem):
        return pl.pallas_call(
            kernel,
            out_shape=jax.ShapeDtypeStruct((num_splits, SUBLANES, LANES), jnp.float32),
            grid_spec=pltpu.PrefetchScalarGridSpec(
                num_scalar_prefetch=0,
                grid=(num_splits, blocks_per_split),
                in_specs=[
                    pl.BlockSpec((tile_rows, LANES), in_index_map),
                    pl.BlockSpec((tile_rows, LANES), in_index_map),
                ],
                out_specs=pl.BlockSpec((1, SUBLANES, LANES), lambda c, i: (c, 0, 0)),
                scratch_shapes=[pltpu.VMEM((SUBLANES, LANES), jnp.float32)],
            ),
            compiler_params=pltpu.CompilerParams(
                dimension_semantics=dim_sem,
                vmem_limit_bytes=vmem_limit,
            ),
        )(x2, w2)

    if num_splits > 1:
        core_par = getattr(pltpu, "CORE_PARALLEL", None)
        arb = getattr(pltpu, "ARBITRARY", "arbitrary")
        try:
            # Explicit core-parallel semantics so the split genuinely lands on
            # both TensorCores (plain "parallel" is not guaranteed to shard).
            partials = run((core_par, arb) if core_par is not None
                           else ("parallel", "arbitrary"))
        except Exception:
            partials = run(("parallel", "arbitrary"))
    else:
        partials = run(("arbitrary", "arbitrary"))

    total = jnp.sum(partials) + tail_sum
    # Negate and divide by the ORIGINAL element count (mean over all elements).
    return -total / jnp.float32(n_elems)


def sim_min_loss_ref(x, weights, margin=0.0):
    xc = jnp.clip(x.astype(jnp.float32), 0.0001, 0.9999)
    return -jnp.mean(jnp.log(1.0 - xc + margin) * weights.astype(jnp.float32))


if __name__ == "__main__":
    key = jax.random.PRNGKey(0)
    k1, k2, k3, k4 = jax.random.split(key, 4)

    # Shapes consistent with a similarity-map usage: [B, C, H, W].
    x = jax.random.uniform(k1, (2, 4, 16, 16), dtype=jnp.float32)
    weights = jax.random.uniform(k2, (2, 4, 16, 16), dtype=jnp.float32)

    loss = jax.block_until_ready(sim_min_loss(x, weights, margin=0.0))
    ref = sim_min_loss_ref(x, weights, margin=0.0)
    assert jnp.allclose(loss, ref, rtol=1e-5, atol=1e-6), (loss, ref)

    # Second case: odd row count exercises the pl.when-gated ragged-row mask path.
    x2 = jax.random.uniform(k3, (2, 4, 16, 17), dtype=jnp.float32)
    w2 = jax.random.uniform(k4, (2, 4, 16, 17), dtype=jnp.float32)
    loss2 = jax.block_until_ready(sim_min_loss(x2, w2, margin=0.0))
    ref2 = sim_min_loss_ref(x2, w2, margin=0.0)
    assert jnp.allclose(loss2, ref2, rtol=1e-5, atol=1e-6), (loss2, ref2)

    print("KERNEL_OK")
</pallas_src>

<mosaic_0001>
module attributes {stable_mosaic.version = 11 : i64} {
  func.func @_simmin_kernel(%arg0: i32, %arg1: i32, %arg2: memref<16x128xf32, #tpu.memory_space<vmem>>, %arg3: memref<16x128xf32, #tpu.memory_space<vmem>>, %arg4: memref<1x8x128xf32, #tpu.memory_space<vmem>>, %arg5: memref<8x128xf32, #tpu.memory_space<vmem>>) attributes {dimension_semantics = [#tpu.dimension_semantics<arbitrary>, #tpu.dimension_semantics<arbitrary>], iteration_bounds = array<i64: 1, 1>, scalar_prefetch = 0 : i64, scratch_operands = 1 : i64, tpu.core_type = #tpu.core_type<tc>, window_params = [{transform_indices = @transform_0, window_bounds = array<i64: 16, 128>}, {transform_indices = @transform_1, window_bounds = array<i64: 16, 128>}, {transform_indices = @transform_2, window_bounds = array<i64: 1, 8, 128>}]} {
    %c0_i32 = arith.constant 0 : i32
    %0 = arith.cmpi eq, %arg1, %c0_i32 : i32
    %1 = arith.extui %0 : i1 to i32
    %c0_i32_0 = arith.constant 0 : i32
    %2 = arith.cmpi ne, %1, %c0_i32_0 : i32
    scf.if %2 {
      %cst_13 = arith.constant 0.000000e+00 : f32
      %21 = vector.broadcast %cst_13 : f32 to vector<8x128xf32>
      %c0_14 = arith.constant 0 : index
      %c0_15 = arith.constant 0 : index
      %22 = vector.load %arg5[%c0_14, %c0_15] : memref<8x128xf32, #tpu.memory_space<vmem>>, vector<8x128xf32>
      tpu.vector_store %arg5[%c0_14, %c0_15], %21 {strides = array<i32>} : memref<8x128xf32, #tpu.memory_space<vmem>>, vector<8x128xf32>,
    } else {
    }
    %c0 = arith.constant 0 : index
    %c0_1 = arith.constant 0 : index
    %3 = vector.load %arg2[%c0, %c0_1] : memref<16x128xf32, #tpu.memory_space<vmem>>, vector<16x128xf32>
    %c0_2 = arith.constant 0 : index
    %c0_3 = arith.constant 0 : index
    %4 = vector.load %arg3[%c0_2, %c0_3] : memref<16x128xf32, #tpu.memory_space<vmem>>, vector<16x128xf32>
    %cst = arith.constant 9.99999974E-5 : f32
    %cst_4 = arith.constant 0.999899983 : f32
    %5 = vector.broadcast %cst : f32 to vector<16x128xf32>
    %6 = arith.maximumf %5, %3 : vector<16x128xf32>
    %7 = vector.broadcast %cst_4 : f32 to vector<16x128xf32>
    %8 = arith.minimumf %7, %6 : vector<16x128xf32>
    %cst_5 = arith.constant 1.000000e+00 : f32
    %9 = vector.broadcast %cst_5 : f32 to vector<16x128xf32>
    %10 = arith.subf %9, %8 : vector<16x128xf32>
    %11 = math.log %10 : vector<16x128xf32>
    %12 = arith.mulf %11, %4 : vector<16x128xf32>
    %c0_6 = arith.constant 0 : index
    %c0_7 = arith.constant 0 : index
    %13 = vector.load %arg5[%c0_6, %c0_7] : memref<8x128xf32, #tpu.memory_space<vmem>>, vector<8x128xf32>
    %14 = vector.shape_cast %12 : vector<16x128xf32> to vector<2x8x128xf32>
    %cst_8 = arith.constant dense<0.000000e+00> : vector<8x128xf32>
    %15 = vector.multi_reduction <add>, %14, %cst_8 [0] : vector<2x8x128xf32> to vector<8x128xf32>
    %16 = arith.addf %13, %15 : vector<8x128xf32>
    %c0_9 = arith.constant 0 : index
    %c0_10 = arith.constant 0 : index
    %17 = vector.load %arg5[%c0_9, %c0_10] : memref<8x128xf32, #tpu.memory_space<vmem>>, vector<8x128xf32>
    tpu.vector_store %arg5[%c0_9, %c0_10], %16 {strides = array<i32>} : memref<8x128xf32, #tpu.memory_space<vmem>>, vector<8x128xf32>,
    %c0_i32_11 = arith.constant 0 : i32
    %18 = arith.cmpi eq, %arg1, %c0_i32_11 : i32
    %19 = arith.extui %18 : i1 to i32
    %c0_i32_12 = arith.constant 0 : i32
    %20 = arith.cmpi ne, %19, %c0_i32_12 : i32
    scf.if %20 {
      %c0_13 = arith.constant 0 : index
      %c0_14 = arith.constant 0 : index
      %21 = vector.load %arg5[%c0_13, %c0_14] : memref<8x128xf32, #tpu.memory_space<vmem>>, vector<8x128xf32>
      %22 = vector.shape_cast %21 : vector<8x128xf32> to vector<1x8x128xf32>
      %c0_15 = arith.constant 0 : index
      %c0_16 = arith.constant 0 : index
      %c0_17 = arith.constant 0 : index
      %23 = vector.load %arg4[%c0_15, %c0_16, %c0_17] : memref<1x8x128xf32, #tpu.memory_space<vmem>>, vector<1x8x128xf32>
      tpu.vector_store %arg4[%c0_15, %c0_16, %c0_17], %22 {strides = array<i32>} : memref<1x8x128xf32, #tpu.memory_space<vmem>>, vector<1x8x128xf32>,
    } else {
    }
    return
  }
  func.func @transform_0(%arg0: i32, %arg1: i32) -> (i32, i32) {
    %c1_i32 = arith.constant 1 : i32
    %0 = arith.muli %arg0, %c1_i32 : i32
    %1 = arith.addi %0, %arg1 : i32
    %c0_i32 = arith.constant 0 : i32
    %2 = arith.minsi %1, %c0_i32 : i32
    %c0_i32_0 = arith.constant 0 : i32
    %c0_i32_1 = arith.constant 0 : i32
    return %2, %c0_i32_0 : i32, i32
  }
  func.func @transform_1(%arg0: i32, %arg1: i32) -> (i32, i32) {
    %c1_i32 = arith.constant 1 : i32
    %0 = arith.muli %arg0, %c1_i32 : i32
    %1 = arith.addi %0, %arg1 : i32
    %c0_i32 = arith.constant 0 : i32
    %2 = arith.minsi %1, %c0_i32 : i32
    %c0_i32_0 = arith.constant 0 : i32
    %c0_i32_1 = arith.constant 0 : i32
    return %2, %c0_i32_0 : i32, i32
  }
  func.func @transform_2(%arg0: i32, %arg1: i32) -> (i32, i32, i32) {
    %c0_i32 = arith.constant 0 : i32
    %c0_i32_0 = arith.constant 0 : i32
    %c0_i32_1 = arith.constant 0 : i32
    return %arg0, %c0_i32, %c0_i32_0 : i32, i32, i32
  }
}

</mosaic_0001>

<bundles_post_ra>
// kernel: tpu_custom_call.1
= control target key start
LH: loop header
LB: loop body
LE: loop exit
PB: predicated region body
PF: predicated region fallthrough
CT: control target
= control target key end

     0   :  { %7 = vsyncpa [#allocation4], 0  ;;  %s214_s0 = inlined_call_operand.hbm [shape: f32[16,128], index: 0, kind: input, shape index: {}]   ;;  %s215_s1 = inlined_call_operand.hbm [shape: f32[16,128], index: 1, kind: input, shape index: {}]   ;;  %s216_s2 = inlined_call_operand.hbm [shape: f32[1,8,128], index: 2, kind: output, shape index: {}]  }
   0x1   :  { %8 = vsyncpa [#allocation7], 0 }
   0x2   :  { %9 = vsyncpa [#allocation5], 0  ;;  %s185_s9 = smov [#allocation3]  }
   0x3   :  { %s21_s10 = sshll.u32 %s185_s9, 4  ;;  %s22_s10 = int_to_ptr.vmem [resolvable:$true] %s21_s10 }
   0x4   :  { %s127_s11 = scalar_lea.vmem %s22_s10, 256  ;;  %p132_p1 = scmp.lt.s32.totalorder %s22_s10, %s22_s10 }
   0x5   :  { %p128_p0 = scmp.ne.s32.totalorder %s22_s10, %s127_s11  ;;  %p133_p2 = scmp.lt.s32.totalorder %s127_s11, %s127_s11 }
   0x7   :  { %p134_p3 = por %p133_p2, %p132_p1 }
   0x9   :  { %p135_p4 = pnand %p134_p3, %p128_p0 }
   0xb   :  { %138 = shalt.err (!%p135_p4)
}
   0xc   :  { %s186_s12 = smov 128   ;;  %s187_s13 = smov 8  }
   0xd   :  { %27 = dma.hbm_to_vmem [thread:$0]  %s214_s0, 256, %s22_s10, [#allocation4], %s186_s12, %s186_s12, %s187_s13  }
   0xe   :  { %s188_s16 = smov [#allocation6]  }
   0xf   :  { %s39_s17 = sshll.u32 %s188_s16, 4  ;;  %s40_s17 = int_to_ptr.vmem [resolvable:$true] %s39_s17 }
  0x10   :  { %s147_s18 = scalar_lea.vmem %s40_s17, 256  ;;  %p152_p6 = scmp.lt.s32.totalorder %s40_s17, %s40_s17 }
  0x11   :  { %p148_p5 = scmp.ne.s32.totalorder %s40_s17, %s147_s18  ;;  %p153_p7 = scmp.lt.s32.totalorder %s147_s18, %s147_s18 }
  0x13   :  { %p154_p8 = por %p153_p7, %p152_p6 }
  0x15   :  { %p155_p9 = pnand %p154_p8, %p148_p5 }
  0x17   :  { %158 = shalt.err (!%p155_p9)
}
  0x18   :  { %45 = dma.hbm_to_vmem [thread:$0]  %s215_s1, 256, %s40_s17, [#allocation7], %s186_s12, %s186_s12, %s187_s13  }
  0x19   :  { %179 = dma.done.wait [#allocation4], 256  }
  0x1a   :  { %180 = vsyncadd [#allocation4], 4294967040 }
  0x1b   :  { %181 = dma.done.wait [#allocation7], 256  }
  0x1c   :  { %182 = vsyncadd [#allocation7], 4294967040  ;;  %v65_v0 = vld [vmem:[#allocation3] sm:$0xff]  ;;  %v66_v1 = vld [vmem:[#allocation3 + $0x8] sm:$0xff]  ;;  %s189_s0 = smov [#allocation8]  }
  0x1d   :  { %v69_v2 = vmax.f32 %v65_v0, 0.0001  ;;  %v70_v3 = vmax.f32 %v66_v1, 0.0001  ;;  %v67_v9 = vld [vmem:[#allocation6] sm:$0xff]  ;;  %v68_v11 = vld [vmem:[#allocation6 + $0x8] sm:$0xff] }
  0x1e   :  { %s96_s1 = sshll.u32 %s189_s0, 4  ;;  %s97_s1 = int_to_ptr.vmem [resolvable:$true] %s96_s1 }
  0x1f   :  { %v71_v4 = vmin.f32 %v69_v2, 0.9999  ;;  %v72_v5 = vmin.f32 %v70_v3, 0.9999  ;;  %s159_s21 = scalar_lea.vmem %s97_s1, 128  ;;  %p164_p11 = scmp.lt.s32.totalorder %s97_s1, %s97_s1 }
  0x20   :  { %p160_p10 = scmp.ne.s32.totalorder %s97_s1, %s159_s21  ;;  %p165_p12 = scmp.lt.s32.totalorder %s159_s21, %s159_s21 }
  0x21   :  { %v73_v6 = vsub.f32 1.0, %v71_v4  ;;  %v74_v7 = vsub.f32 1.0, %v72_v5 }
  0x22   :  { %p166_p13 = por %p165_p12, %p164_p11 }
  0x23   :  { %115 = vlog2.f32 %v73_v6 }
  0x24   :  { %117 = vlog2.f32 %v74_v7  ;;  %p167_p0 = pnand %p166_p13, %p160_p10 }
  0x30   :  { %v116_v8 = vpop.eup %115 }
  0x31   :  { %v118_v10 = vpop.eup %117  ;;  %v76_v12 = vmul.f32 0.6931472, %v116_v8 }
  0x32   :  { %v78_v13 = vmul.f32 0.6931472, %v118_v10 }
  0x33   :  { %v79_v14 = vmul.f32 %v76_v12, %v67_v9 }
  0x34   :  { %v80_v15 = vmul.f32 %v78_v13, %v68_v11 }
  0x36   :  { %v82_v16 = vadd.f32 %v80_v15, %v79_v14 }
  0x38   :  { %89 = vst [vmem:[#allocation8] sm:$0xff] %v82_v16 }
  0x39   :  { %170 = shalt.err (!%p167_p0)
}
  0x3a   :  { %99 = dma.vmem_to_hbm [thread:$0]  %s97_s1, 128, %s216_s2, [#allocation5]  }
  0x3b   :  { %183 = dma.done.wait [#allocation5], 128  }
  0x3c   :  { %184 = vsyncadd [#allocation5], 4294967168 }
  0x3d   :  { %103 = vsyncpa [#allocation4], 1 }
  0x3e   :  { %104 = vsyncpa [#allocation7], 1 }
  0x3f   :  { %105 = vsyncpa [#allocation5], 1 }

</bundles_post_ra>
